<compile_context>
chip_gen: v6e
topology: v6e:2x2x1
jax: 0.10.0
libtpu: 0.0.40
codegen_flags: <defaults>
</compile_context>

<pallas_src>
import functools

import jax
import jax.numpy as jnp
from jax.experimental import pallas as pl
from jax.experimental.pallas import tpu as pltpu


def _fused_conv_kernel(l_ref, w_ref, scale_ref, shift_ref, o_ref, *,
                       negative_slope):
    # l_ref:     (M, Kpad)   bf16 row-strip im2col slab (batch folded into M)
    # w_ref:     (Kpad, NL)  bf16 Toeplitz-expanded conv weight (unscaled)
    # scale_ref: (1, NL)     f32  BN scale, pre-tiled to the (w, c) lane layout
    # shift_ref: (1, NL)     f32  BN shift, pre-tiled to the (w, c) lane layout
    # o_ref:     (M, NL)     f32  lane-dense output slab
    y = jnp.dot(l_ref[...], w_ref[...], preferred_element_type=jnp.float32)
    y = y * scale_ref[...] + shift_ref[...]          # BN epilogue (f32)
    y = jnp.where(y > 0, y, negative_slope * y)      # LeakyReLU
    o_ref[...] = y.astype(o_ref.dtype)


def fold_params(weight_oihw, gamma, beta, running_mean, running_var, *,
                H, W, padding=1, eps=1e-5, matmul_dtype=jnp.bfloat16):
    """One-time (per model) folding of conv weight + BN stats.

    Returns:
      w_big:     (Kpad, Wo*Cout) matmul_dtype Toeplitz-expanded conv weight
      scale_row: (1, Wo*Cout)    f32 per-lane BN scale
      shift_row: (1, Wo*Cout)    f32 per-lane BN shift
    """
    Cout, Cin, KH, KW = weight_oihw.shape
    Wp = W + 2 * padding
    Wo = Wp - KW + 1
    K = KH * Wp * Cin
    NL = Wo * Cout
    Kpad = pl.cdiv(K, 128) * 128          # 216 -> 256: clean tile multiples

    # BN folding (inference mode).
    scale = (gamma / jnp.sqrt(running_var.astype(jnp.float32) + eps))
    shift = (beta - running_mean * scale).astype(jnp.float32)
    scale = scale.astype(jnp.float32)

    # Toeplitz expansion (weight kept UNscaled; BN scale applied in epilogue):
    #   w_big[kh*Wp*Cin + j*Cin + cin, w*Cout + c] = w[kh, j-w, cin, c]
    w_hwio = jnp.transpose(weight_oihw, (2, 3, 1, 0)).astype(jnp.float32)
    blocks = [jnp.pad(w_hwio, ((0, 0), (w, Wp - KW - w), (0, 0), (0, 0)))
              for w in range(Wo)]
    w_big = jnp.stack(blocks, axis=3).reshape(K, NL)
    w_big = jnp.pad(w_big, ((0, Kpad - K), (0, 0))).astype(matmul_dtype)

    # Per-lane rows in the (w, c) layout: row[0, w*Cout + c] = scale/shift[c].
    scale_row = jnp.tile(scale, Wo).reshape(1, NL)
    shift_row = jnp.tile(shift, Wo).reshape(1, NL)
    return w_big, scale_row, shift_row


@functools.partial(
    jax.jit,
    static_argnames=("kh", "padding", "c_out", "negative_slope", "nchw_out"))
def basic_conv_forward(x_nchw, w_big, scale_row, shift_row, *,
                       kh, padding, c_out, negative_slope=0.01,
                       nchw_out=True):
    """BasicConv forward: Conv2d(bias=False) + BN(eval) + LeakyReLU.

    x_nchw: (N, Cin, H, W); constants from fold_params(). Output is NCHW by
    default; set nchw_out=False to get NHWC and skip the final relayout.
    """
    N, Cin, H, W = x_nchw.shape
    Kpad, NL = w_big.shape
    Hp, Wp = H + 2 * padding, W + 2 * padding
    Ho = Hp - kh + 1
    Wo = NL // c_out
    K = kh * Wp * Cin
    M = N * Ho                                        # batch folded into M

    # ---- glue (fused by jit): layout + row-strip im2col ----
    x = jnp.transpose(x_nchw, (0, 2, 3, 1))           # NHWC
    xp = jnp.pad(x, ((0, 0), (padding, padding), (padding, padding), (0, 0)))
    # L[n, h, khi*Wp*Cin + j*Cin + c] = xp[n, h+khi, j, c]
    L = jnp.concatenate(
        [xp[:, khi:khi + Ho].reshape(N, Ho, Wp * Cin) for khi in range(kh)],
        axis=-1).reshape(M, K)
    if Kpad > K:
        L = jnp.pad(L, ((0, 0), (0, Kpad - K)))       # zero-pad contraction dim
    L = L.astype(w_big.dtype)

    cost = pl.CostEstimate(
        flops=2 * M * Kpad * NL,                      # Toeplitz matmul FLOPs
        transcendentals=0,
        bytes_accessed=(L.size * L.dtype.itemsize
                        + w_big.size * w_big.dtype.itemsize
                        + 2 * NL * 4 + M * NL * 4))

    out_flat = pl.pallas_call(
        functools.partial(_fused_conv_kernel, negative_slope=negative_slope),
        out_shape=jax.ShapeDtypeStruct((M, NL), jnp.float32),
        grid=(1,),
        in_specs=[
            pl.BlockSpec((M, Kpad), lambda i: (0, 0)),
            pl.BlockSpec((Kpad, NL), lambda i: (0, 0)),
            pl.BlockSpec((1, NL), lambda i: (0, 0)),
            pl.BlockSpec((1, NL), lambda i: (0, 0)),
        ],
        out_specs=pl.BlockSpec((M, NL), lambda i: (0, 0)),
        compiler_params=pltpu.CompilerParams(
            dimension_semantics=("arbitrary",)),
        cost_estimate=cost,
    )(L, w_big, scale_row, shift_row)

    out = out_flat.reshape(N, Ho, Wo, c_out)          # NHWC
    if nchw_out:
        out = jnp.transpose(out, (0, 3, 1, 2))        # NCHW (module semantics)
    return out.astype(x_nchw.dtype)


def _reference(x_nchw, weight_oihw, gamma, beta, running_mean, running_var,
               *, eps=1e-5, negative_slope=0.01):
    """Pure-JAX f32 reference (lax conv) for correctness check."""
    x = jnp.transpose(x_nchw, (0, 2, 3, 1))
    w = jnp.transpose(weight_oihw, (2, 3, 1, 0))
    y = jax.lax.conv_general_dilated(
        x, w, window_strides=(1, 1), padding=((1, 1), (1, 1)),
        dimension_numbers=("NHWC", "HWIO", "NHWC"))
    scale = gamma / jnp.sqrt(running_var + eps)
    shift = beta - running_mean * scale
    y = y * scale + shift
    y = jnp.where(y > 0, y, negative_slope * y)
    return jnp.transpose(y, (0, 3, 1, 2))


if __name__ == "__main__":
    # BasicConv(in_channels=4, out_channels=8, kernel_size=3, stride=1, padding=1)
    N, Cin, H, W = 2, 4, 16, 16
    Cout, KH, KW = 8, 3, 3

    key = jax.random.PRNGKey(0)
    k_x, k_w, k_g, k_b, k_m, k_v = jax.random.split(key, 6)

    x = jax.random.normal(k_x, (N, Cin, H, W), dtype=jnp.float32)
    weight = jax.random.normal(k_w, (Cout, Cin, KH, KW), dtype=jnp.float32) * 0.1
    gamma = 1.0 + 0.1 * jax.random.normal(k_g, (Cout,), dtype=jnp.float32)
    beta = 0.1 * jax.random.normal(k_b, (Cout,), dtype=jnp.float32)
    running_mean = 0.1 * jax.random.normal(k_m, (Cout,), dtype=jnp.float32)
    running_var = jax.nn.softplus(
        jax.random.normal(k_v, (Cout,), dtype=jnp.float32)) + 0.5

    # One-time parameter folding (cached per model in a real deployment).
    w_big, scale_row, shift_row = fold_params(
        weight, gamma, beta, running_mean, running_var,
        H=H, W=W, padding=1, eps=1e-5, matmul_dtype=jnp.bfloat16)
    w_big, scale_row, shift_row = jax.block_until_ready(
        (w_big, scale_row, shift_row))

    out = basic_conv_forward(x, w_big, scale_row, shift_row,
                             kh=KH, padding=1, c_out=Cout,
                             negative_slope=0.01, nchw_out=True)
    out = jax.block_until_ready(out)

    ref = _reference(x, weight, gamma, beta, running_mean, running_var)
    assert out.shape == (N, Cout, H, W), out.shape
    # bf16 matmul operands (f32 accumulation + f32 BN epilogue) vs f32 ref.
    assert jnp.allclose(out, ref, atol=5e-2, rtol=5e-2), \
        float(jnp.max(jnp.abs(out - ref)))

    print("KERNEL_OK")
</pallas_src>

<mosaic_0001>
module attributes {stable_mosaic.version = 11 : i64} {
  func.func @_fused_conv_kernel(%arg0: i32, %arg1: memref<32x256xbf16, #tpu.memory_space<vmem>>, %arg2: memref<256x128xbf16, #tpu.memory_space<vmem>>, %arg3: memref<1x128xf32, #tpu.memory_space<vmem>>, %arg4: memref<1x128xf32, #tpu.memory_space<vmem>>, %arg5: memref<32x128xf32, #tpu.memory_space<vmem>>) attributes {dimension_semantics = [#tpu.dimension_semantics<arbitrary>], iteration_bounds = array<i64: 1>, scalar_prefetch = 0 : i64, scratch_operands = 0 : i64, tpu.core_type = #tpu.core_type<tc>, window_params = [{pipeline_mode = #tpu.pipeline_mode<synchronous>, transform_indices = @transform_0, window_bounds = array<i64: 32, 256>}, {pipeline_mode = #tpu.pipeline_mode<synchronous>, transform_indices = @transform_1, window_bounds = array<i64: 256, 128>}, {pipeline_mode = #tpu.pipeline_mode<synchronous>, transform_indices = @transform_2, window_bounds = array<i64: 1, 128>}, {pipeline_mode = #tpu.pipeline_mode<synchronous>, transform_indices = @transform_3, window_bounds = array<i64: 1, 128>}, {pipeline_mode = #tpu.pipeline_mode<synchronous>, transform_indices = @transform_4, window_bounds = array<i64: 32, 128>}]} {
    %c0 = arith.constant 0 : index
    %c0_0 = arith.constant 0 : index
    %0 = vector.load %arg1[%c0, %c0_0] : memref<32x256xbf16, #tpu.memory_space<vmem>>, vector<32x256xbf16>
    %c0_1 = arith.constant 0 : index
    %c0_2 = arith.constant 0 : index
    %1 = vector.load %arg2[%c0_1, %c0_2] : memref<256x128xbf16, #tpu.memory_space<vmem>>, vector<256x128xbf16>
    %cst = arith.constant dense<0.000000e+00> : vector<32x128xf32>
    %2 = tpu.matmul %0, %1, %cst {dimension_numbers = #tpu.dot_dimension_numbers<[1], [0], [0], [1], [0, 0, 1, 1], [], []>} : vector<32x256xbf16>, vector<256x128xbf16>, vector<32x128xf32> -> vector<32x128xf32>
    %c0_3 = arith.constant 0 : index
    %c0_4 = arith.constant 0 : index
    %3 = vector.load %arg3[%c0_3, %c0_4] : memref<1x128xf32, #tpu.memory_space<vmem>>, vector<1x128xf32>
    %4 = vector.broadcast %3 : vector<1x128xf32> to vector<32x128xf32>
    %5 = arith.mulf %2, %4 : vector<32x128xf32>
    %c0_5 = arith.constant 0 : index
    %c0_6 = arith.constant 0 : index
    %6 = vector.load %arg4[%c0_5, %c0_6] : memref<1x128xf32, #tpu.memory_space<vmem>>, vector<1x128xf32>
    %7 = vector.broadcast %6 : vector<1x128xf32> to vector<32x128xf32>
    %8 = arith.addf %5, %7 : vector<32x128xf32>
    %cst_7 = arith.constant 0.000000e+00 : f32
    %9 = vector.broadcast %cst_7 : f32 to vector<32x128xf32>
    %10 = arith.cmpf ogt, %8, %9 : vector<32x128xf32>
    %cst_8 = arith.constant 0.00999999977 : f32
    %11 = vector.broadcast %cst_8 : f32 to vector<32x128xf32>
    %12 = arith.mulf %11, %8 : vector<32x128xf32>
    %13 = arith.select %10, %8, %12 : vector<32x128xi1>, vector<32x128xf32>
    %c0_9 = arith.constant 0 : index
    %c0_10 = arith.constant 0 : index
    %14 = vector.load %arg5[%c0_9, %c0_10] : memref<32x128xf32, #tpu.memory_space<vmem>>, vector<32x128xf32>
    tpu.vector_store %arg5[%c0_9, %c0_10], %13 {strides = array<i32>} : memref<32x128xf32, #tpu.memory_space<vmem>>, vector<32x128xf32>,
    return
  }
  func.func @transform_0(%arg0: i32) -> (i32, i32) {
    %c0_i32 = arith.constant 0 : i32
    %c0_i32_0 = arith.constant 0 : i32
    %c0_i32_1 = arith.constant 0 : i32
    return %c0_i32, %c0_i32_0 : i32, i32
  }
  func.func @transform_1(%arg0: i32) -> (i32, i32) {
    %c0_i32 = arith.constant 0 : i32
    %c0_i32_0 = arith.constant 0 : i32
    %c0_i32_1 = arith.constant 0 : i32
    return %c0_i32, %c0_i32_0 : i32, i32
  }
  func.func @transform_2(%arg0: i32) -> (i32, i32) {
    %c0_i32 = arith.constant 0 : i32
    %c0_i32_0 = arith.constant 0 : i32
    %c0_i32_1 = arith.constant 0 : i32
    return %c0_i32, %c0_i32_0 : i32, i32
  }
  func.func @transform_3(%arg0: i32) -> (i32, i32) {
    %c0_i32 = arith.constant 0 : i32
    %c0_i32_0 = arith.constant 0 : i32
    %c0_i32_1 = arith.constant 0 : i32
    return %c0_i32, %c0_i32_0 : i32, i32
  }
  func.func @transform_4(%arg0: i32) -> (i32, i32) {
    %c0_i32 = arith.constant 0 : i32
    %c0_i32_0 = arith.constant 0 : i32
    %c0_i32_1 = arith.constant 0 : i32
    return %c0_i32, %c0_i32_0 : i32, i32
  }
}

</mosaic_0001>

<bundles_post_ra>
// kernel: basic_conv_forward.1
= control target key start
LH: loop header
LB: loop body
LE: loop exit
PB: predicated region body
PF: predicated region fallthrough
CT: control target
= control target key end

     0   :  { %s452_s1 = inlined_call_operand.vmem [shape: bf16[256,128], index: 1, kind: input, shape index: {}]   ;;  %s453_s0 = inlined_call_operand.vmem [shape: bf16[32,256], index: 0, kind: input, shape index: {}]   ;;  %s454_s2 = inlined_call_operand.vmem [shape: f32[1,128], index: 2, kind: input, shape index: {}]   ;;  %s455_s3 = inlined_call_operand.vmem [shape: f32[1,128], index: 3, kind: input, shape index: {}]   ;;  %s456_s4 = inlined_call_operand.vmem [shape: f32[32,128], index: 4, kind: output, shape index: {}]  }
   0x1   :  { %v327_v0 = vld [vmem:[%s452_s1 + $0x78] sm:$0xff]   ;;  %v329_v2 = vld [vmem:[%s452_s1 + $0x70] sm:$0xff]   ;;  %v331_v4 = vld [vmem:[%s452_s1 + $0x68] sm:$0xff]  }
   0x2   :  { %v328_v1 = vld [vmem:[%s452_s1 + $0x38] sm:$0xff]   ;;  %283 = vmatprep.subr.bf16.mxu0 %v327_v0  ;;  %311 = vmatprep.subr.bf16.mxu1 %v327_v0  ;;  %v330_v3 = vld [vmem:[%s452_s1 + $0x30] sm:$0xff]   ;;  %v332_v5 = vld [vmem:[%s452_s1 + $0x28] sm:$0xff]  }
   0x3   :  { %284 = vmatpush3.bf16.msra.mxu0 %v328_v1  ;;  %319 = vmatpush3.bf16.msra.mxu1 %v328_v1  ;;  %v333_v6 = vld [vmem:[%s452_s1 + $0x60] sm:$0xff]   ;;  %v335_v8 = vld [vmem:[%s452_s1 + $0x58] sm:$0xff]   ;;  %v337_v10 = vld [vmem:[%s452_s1 + $0x50] sm:$0xff]  }
   0x4   :  { %285 = vmatprep.subr.bf16.mxu0 %v329_v2  ;;  %312 = vmatprep.subr.bf16.mxu1 %v329_v2  ;;  %v334_v7 = vld [vmem:[%s452_s1 + $0x20] sm:$0xff]   ;;  %v336_v9 = vld [vmem:[%s452_s1 + $0x18] sm:$0xff]   ;;  %v338_v13 = vld [vmem:[%s452_s1 + $0x10] sm:$0xff]  }
   0x5   :  { %v345_v11 = vld [vmem:[%s453_s0 + $0x4] ss:$8 sps:$4 sm:$0xff]   ;;  %v348_v12 = vld [vmem:[%s453_s0 + $0x14] ss:$8 sps:$4 sm:$0xff]   ;;  %v343_v18 = vld [vmem:[%s453_s0] ss:$8 sps:$4 sm:$0xff]  }
   0x6   :  { %v339_v14 = vld [vmem:[%s452_s1 + $0x48] sm:$0xff]   ;;  %202 = vmatprep.mubr.bf16.mxu0 %v345_v11  ;;  %210 = vmatprep.mubr.bf16.mxu1 %v348_v12  ;;  %v341_v16 = vld [vmem:[%s452_s1 + $0x40] sm:$0xff]   ;;  %v346_v19 = vld [vmem:[%s453_s0 + $0x10] ss:$8 sps:$4 sm:$0xff]  }
   0x7   :  { %286 = vmatpush3.bf16.msra.mxu0 %v330_v3  ;;  %320 = vmatpush3.bf16.msra.mxu1 %v330_v3  ;;  %v340_v15 = vld [vmem:[%s452_s1 + $0x8] sm:$0xff]   ;;  %v342_v17 = vld [vmem:[%s452_s1] sm:$0xff]  }
   0x8   :  { %287 = vmatprep.subr.bf16.mxu0 %v331_v4  ;;  %313 = vmatprep.subr.bf16.mxu1 %v331_v4  ;;  %v281_v23 = vld [vmem:[%s454_s2] ss:$0 sm:$0xff] }
   0x9   :  { %v282_v27 = vld [vmem:[%s455_s3] ss:$0 sm:$0xff] }
   0xb   :  { %288 = vmatpush3.bf16.msra.mxu0 %v332_v5  ;;  %321 = vmatpush3.bf16.msra.mxu1 %v332_v5 }
   0xc   :  { %289 = vmatprep.subr.bf16.mxu0 %v333_v6  ;;  %314 = vmatprep.subr.bf16.mxu1 %v333_v6 }
   0xf   :  { %290 = vmatpush3.bf16.msra.mxu0 %v334_v7  ;;  %322 = vmatpush3.bf16.msra.mxu1 %v334_v7 }
  0x10   :  { %291 = vmatprep.subr.bf16.mxu0 %v335_v8  ;;  %315 = vmatprep.subr.bf16.mxu1 %v335_v8 }
  0x13   :  { %292 = vmatpush3.bf16.msra.mxu0 %v336_v9  ;;  %323 = vmatpush3.bf16.msra.mxu1 %v336_v9 }
  0x14   :  { %293 = vmatprep.subr.bf16.mxu0 %v337_v10  ;;  %316 = vmatprep.subr.bf16.mxu1 %v337_v10 }
  0x17   :  { %294 = vmatpush3.bf16.msra.mxu0 %v338_v13  ;;  %324 = vmatpush3.bf16.msra.mxu1 %v338_v13 }
  0x18   :  { %295 = vmatprep.subr.bf16.mxu0 %v339_v14  ;;  %317 = vmatprep.subr.bf16.mxu1 %v339_v14 }
  0x1b   :  { %296 = vmatpush3.bf16.msra.mxu0 %v340_v15  ;;  %325 = vmatpush3.bf16.msra.mxu1 %v340_v15 }
  0x1c   :  { %297 = vmatprep.subr.bf16.mxu0 %v341_v16  ;;  %318 = vmatprep.subr.bf16.mxu1 %v341_v16 }
  0x1f   :  { %298 = vmatpush3.bf16.msra.mxu0 %v342_v17  ;;  %326 = vmatpush3.bf16.msra.mxu1 %v342_v17 }
  0x22   :  { %203 = vmatmul.mubr.bf16.vlgmr.msra.gmra.mxu0 %v343_v18  ;;  %211 = vmatmul.mubr.bf16.vlgmr.msra.gmra.mxu1 %v346_v19 }
  0xe2   :  { %v299_v20 = vpop.f32.mrf.mxu0  ;;  %v305_v21 = vpop.f32.mrf.mxu1 }
  0xe4   :  { %v300_v22 = vpop.f32.mrf.mxu0  ;;  %v306_v24 = vpop.f32.mrf.mxu1 }
  0xe5   :  { %v301_v25 = vadd.f32 %v300_v22, %v299_v20  ;;  %v307_v26 = vadd.f32 %v306_v24, %v305_v21 }
  0xe6   :  { %v302_v28 = vpop.f32.mrf.mxu0  ;;  %v308_v29 = vpop.f32.mrf.mxu1 }
  0xe7   :  { %v226_v30 = vmul.f32 %v301_v25, %v281_v23  ;;  %v228_v31 = vmul.f32 %v307_v26, %v281_v23 }
  0xe8   :  { %v303_v32 = vpop.f32.mrf.mxu0  ;;  %v309_v33 = vpop.f32.mrf.mxu1 }
  0xe9   :  { %v237_v34 = vadd.f32 %v282_v27, %v226_v30  ;;  %v239_v35 = vadd.f32 %v282_v27, %v228_v31  ;;  %v304_v36 = vadd.f32 %v303_v32, %v302_v28  ;;  %v310_v37 = vadd.f32 %v309_v33, %v308_v29 }
  0xeb   :  { %vm241_vm0 = vcmp.gt.f32.partialorder %v237_v34, 0.0  ;;  %v245_v38 = vmul.f32 0.01, %v237_v34  ;;  %vm243_vm1 = vcmp.gt.f32.partialorder %v239_v35, 0.0  ;;  %v247_v39 = vmul.f32 0.01, %v239_v35 }
  0xec   :  { %v227_v40 = vmul.f32 %v304_v36, %v281_v23  ;;  %v229_v41 = vmul.f32 %v310_v37, %v281_v23 }
  0xed   :  { %v249_v42 = vsel %vm241_vm0, %v237_v34, %v245_v38  ;;  %v251_v43 = vsel %vm243_vm1, %v239_v35, %v247_v39 }
  0xee   :  { %253 = vst [vmem:[%s456_s4] sm:$0xff] %v249_v42  ;;  %255 = vst [vmem:[%s456_s4 + $0x10] sm:$0xff] %v251_v43  ;;  %v238_v44 = vadd.f32 %v282_v27, %v227_v40  ;;  %v240_v45 = vadd.f32 %v282_v27, %v229_v41 }
  0xf0   :  { %vm242_vm2 = vcmp.gt.f32.partialorder %v238_v44, 0.0  ;;  %v246_v46 = vmul.f32 0.01, %v238_v44  ;;  %vm244_vm3 = vcmp.gt.f32.partialorder %v240_v45, 0.0  ;;  %v248_v47 = vmul.f32 0.01, %v240_v45 }
  0xf2   :  { %v250_v48 = vsel %vm242_vm2, %v238_v44, %v246_v46  ;;  %v252_v49 = vsel %vm244_vm3, %v240_v45, %v248_v47 }
  0xf3   :  { %254 = vst [vmem:[%s456_s4 + $0x8] sm:$0xff] %v250_v48  ;;  %256 = vst [vmem:[%s456_s4 + $0x18] sm:$0xff] %v252_v49 }

</bundles_post_ra>
